<compile_context>
chip_gen: v7x
topology: tpu7x:2x2x1
jax: 0.10.0
libtpu: 0.0.40
codegen_flags: <defaults>
</compile_context>

<pallas_src>
import functools

import jax
import jax.numpy as jnp
from jax.experimental import pallas as pl
from jax.experimental.pallas import tpu as pltpu

IGNORE_INDEX = 255

_TARGET_STEP_BYTES = 4 << 20   # aim for >= ~4 MiB of HBM traffic per grid step
_VMEM_BUDGET_BYTES = 24 << 20  # input buffers + f32 temporaries budget
_VMEM_LIMIT_BYTES = 32 << 20   # raise v5e's 16 MiB scoped default; safe on v7x


def _ce2d_kernel(x_ref, t_ref, loss_ref, cnt_ref, sum_acc, cnt_acc,
                 *, hw, num_classes, tile, chunks_per_split):
    s = pl.program_id(1)
    j = pl.program_id(2)
    chunk = s * chunks_per_split + j          # logical pixel-chunk index

    @pl.when(j == 0)
    def _():
        sum_acc[...] = jnp.zeros_like(sum_acc)
        cnt_acc[...] = jnp.zeros_like(cnt_acc)

    x = x_ref[0].astype(jnp.float32)          # (C, T)  channels on sublanes
    t = t_ref[0].astype(jnp.int32)            # (1, T)  targets (native dtype in HBM)

    # log_softmax along the (small) channel axis, numerically stable.
    m = jnp.max(x, axis=0, keepdims=True)                              # (1, T)
    shifted = x - m
    lse = jnp.log(jnp.sum(jnp.exp(shifted), axis=0, keepdims=True))    # (1, T)

    # Gather shifted[target].  Very small C: short select chain.  Otherwise:
    # broadcasted-iota masked sum (full-vreg passes, no serial chain).
    if num_classes <= 8:
        picked = shifted[0:1, :]
        for c in range(1, num_classes):
            picked = jnp.where(t == c, shifted[c:c + 1, :], picked)
    else:
        cls = jax.lax.broadcasted_iota(jnp.int32, shifted.shape, 0)
        picked = jnp.sum(jnp.where(cls == t, shifted, 0.0),
                         axis=0, keepdims=True)

    # -log p(target) = lse - shifted[target]; ignore_index pixels contribute 0.
    not_ignored = t != IGNORE_INDEX
    nll = jnp.where(not_ignored, lse - picked, 0.0)                    # (1, T)
    cnt = not_ignored.astype(jnp.float32)                              # (1, T)

    # Only tail / padded chunks pay for the positional mask.  Out-of-range
    # columns may hold garbage (possibly NaN after exp/log) but jnp.where is
    # a true select, so they never reach the accumulators.
    is_tail = (chunk + 1) * tile > hw

    @pl.when(jnp.logical_not(is_tail))
    def _():
        sum_acc[...] += nll
        cnt_acc[...] += cnt

    @pl.when(is_tail)
    def _():
        pos = chunk * tile + jax.lax.broadcasted_iota(jnp.int32, t.shape, 1)
        in_range = pos < hw
        sum_acc[...] += jnp.where(in_range, nll, 0.0)
        cnt_acc[...] += jnp.where(in_range, cnt, 0.0)

    # One cross-lane reduction per (n, s) unit, in the epilogue only.
    @pl.when(j == pl.num_programs(2) - 1)
    def _():
        loss_ref[...] = jnp.sum(sum_acc[...], axis=1,
                                keepdims=True).reshape(1, 1, 1, 1)
        cnt_ref[...] = jnp.sum(cnt_acc[...], axis=1,
                               keepdims=True).reshape(1, 1, 1, 1)


def cross_entropy_loss_2d(inputs, targets, *, tile_pixels=None,
                          pixel_splits=None):
    """inputs: (N, C, H, W) float (f32 or bf16); targets: (N, H, W) int.

    Returns the scalar mean loss over pixels whose target != 255, matching
    nn.NLLLoss(weight=None, size_average=True, ignore_index=255) applied to
    F.log_softmax over the channel dim.
    """
    N, C, H, W = inputs.shape
    HW = H * W

    # Free reshapes of contiguous NCHW memory -- no transpose, no dtype copy.
    x3 = inputs.reshape(N, C, HW)
    t3 = targets.reshape(N, 1, HW)          # keep native (narrow) dtype

    x_dsize = x3.dtype.itemsize
    t_dsize = t3.dtype.itemsize

    # ---- pixel-tile selection -------------------------------------------
    if HW < 128:
        T = HW                               # full-extent block
    else:
        per_pixel_step = C * x_dsize + t_dsize               # HBM bytes / pixel / step
        # double-buffered inputs + 2 f32 scratch rows + ~3 live (C,T) f32 temps
        per_pixel_vmem = 2 * per_pixel_step + 2 * 4 + 3 * C * 4
        t_max = min(_TARGET_STEP_BYTES // per_pixel_step,
                    _VMEM_BUDGET_BYTES // per_pixel_vmem)
        if tile_pixels is not None:
            t_max = min(t_max, tile_pixels)
        T = max(128, (min(t_max, HW) // 128) * 128)
    total_chunks = -(-HW // T)

    # ---- pixel split so 2 TCs (v7x) get work even when N is small --------
    if pixel_splits is None:
        pixel_splits = 2 if (N < 2 and total_chunks >= 2) else 1
    S = max(1, min(pixel_splits, total_chunks))
    J = -(-total_chunks // S)                # chunks per split (may pad)
    last_chunk = total_chunks - 1

    def x_index_map(n, s, j):
        return (n, 0, jnp.minimum(s * J + j, last_chunk))

    def t_index_map(n, s, j):
        return (n, 0, jnp.minimum(s * J + j, last_chunk))

    def out_index_map(n, s, j):
        return (n, s, 0, 0)

    kernel = functools.partial(_ce2d_kernel, hw=HW, num_classes=C, tile=T,
                               chunks_per_split=J)

    loss_part, cnt_part = pl.pallas_call(
        kernel,
        out_shape=(
            jax.ShapeDtypeStruct((N, S, 1, 1), jnp.float32),
            jax.ShapeDtypeStruct((N, S, 1, 1), jnp.float32),
        ),
        grid_spec=pltpu.PrefetchScalarGridSpec(
            num_scalar_prefetch=0,
            grid=(N, S, J),
            in_specs=[
                pl.BlockSpec((1, C, T), x_index_map),
                pl.BlockSpec((1, 1, T), t_index_map),
            ],
            out_specs=[
                pl.BlockSpec((1, 1, 1, 1), out_index_map),
                pl.BlockSpec((1, 1, 1, 1), out_index_map),
            ],
            scratch_shapes=[
                pltpu.VMEM((1, T), jnp.float32),
                pltpu.VMEM((1, T), jnp.float32),
            ],
        ),
        compiler_params=pltpu.CompilerParams(
            dimension_semantics=("parallel", "parallel", "arbitrary"),
            vmem_limit_bytes=_VMEM_LIMIT_BYTES),
    )(x3, t3)

    # size_average=True -> mean over non-ignored pixels (weight=None).
    # NOTE: if every pixel is ignore_index this is 0/0 = NaN (PyTorch-like).
    return jnp.sum(loss_part) / jnp.sum(cnt_part)


def _reference(inputs, targets):
    """Pure-JAX reference for sanity checking."""
    x = jnp.transpose(inputs, (0, 2, 3, 1)).astype(jnp.float32)  # NHWC
    logp = jax.nn.log_softmax(x, axis=-1)
    t = targets.astype(jnp.int32)
    valid = t != IGNORE_INDEX
    t_safe = jnp.where(valid, t, 0)
    picked = jnp.take_along_axis(logp, t_safe[..., None], axis=-1)[..., 0]
    return jnp.sum(jnp.where(valid, -picked, 0.0)) / jnp.sum(valid)


def _make_case(key, n, c, h, w):
    k1, k2, k3 = jax.random.split(key, 3)
    x = jax.random.normal(k1, (n, c, h, w), dtype=jnp.float32)
    t = jax.random.randint(k2, (n, h, w), 0, c, dtype=jnp.int32)
    ignore_mask = jax.random.bernoulli(k3, 0.1, (n, h, w))
    t = jnp.where(ignore_mask, IGNORE_INDEX, t)
    return x, t


if __name__ == "__main__":
    key = jax.random.PRNGKey(0)
    k0, k1, k2 = jax.random.split(key, 3)

    # Case 1: the canonical small shape (single chunk).
    x, t = _make_case(k0, 2, 4, 16, 16)
    loss = jax.block_until_ready(cross_entropy_loss_2d(x, t))
    ref = jax.block_until_ready(_reference(x, t))
    assert jnp.allclose(loss, ref, rtol=1e-5, atol=1e-5), (loss, ref)

    # Case 2: forced small tile + explicit pixel split (exercises the
    # (N, S, J) grid and per-(n, s) partial reduction).
    loss2 = jax.block_until_ready(
        cross_entropy_loss_2d(x, t, tile_pixels=128, pixel_splits=2))
    assert jnp.allclose(loss2, ref, rtol=1e-5, atol=1e-5), (loss2, ref)

    # Case 3: N=1, ragged H*W (tail masking + auto pixel split + clamped
    # padded chunk).
    x3, t3 = _make_case(k1, 1, 3, 15, 20)
    loss3 = jax.block_until_ready(
        cross_entropy_loss_2d(x3, t3, tile_pixels=128))
    ref3 = jax.block_until_ready(_reference(x3, t3))
    assert jnp.allclose(loss3, ref3, rtol=1e-5, atol=1e-5), (loss3, ref3)

    # Case 4: larger class count -> broadcasted-iota masked-sum gather path,
    # bf16 logits (kernel accumulates in f32).
    x4, t4 = _make_case(k2, 2, 21, 12, 16)
    x4 = x4.astype(jnp.bfloat16)
    loss4 = jax.block_until_ready(cross_entropy_loss_2d(x4, t4))
    ref4 = jax.block_until_ready(_reference(x4, t4))
    assert jnp.allclose(loss4, ref4, rtol=2e-2, atol=2e-2), (loss4, ref4)

    print("KERNEL_OK")
</pallas_src>

<mosaic_0001>
module attributes {stable_mosaic.version = 11 : i64} {
  func.func @_ce2d_kernel(%arg0: i32, %arg1: i32, %arg2: i32, %arg3: memref<1x4x256xf32, #tpu.memory_space<vmem>>, %arg4: memref<1x1x256xi32, #tpu.memory_space<vmem>>, %arg5: memref<1x1x1x1xf32, #tpu.memory_space<vmem>>, %arg6: memref<1x1x1x1xf32, #tpu.memory_space<vmem>>, %arg7: memref<1x256xf32, #tpu.memory_space<vmem>>, %arg8: memref<1x256xf32, #tpu.memory_space<vmem>>) attributes {dimension_semantics = [#tpu.dimension_semantics<parallel>, #tpu.dimension_semantics<parallel>, #tpu.dimension_semantics<arbitrary>], iteration_bounds = array<i64: 2, 1, 1>, scalar_prefetch = 0 : i64, scratch_operands = 2 : i64, tpu.core_type = #tpu.core_type<tc>, window_params = [{transform_indices = @transform_0, window_bounds = array<i64: 1, 4, 256>}, {transform_indices = @transform_1, window_bounds = array<i64: 1, 1, 256>}, {transform_indices = @transform_2, window_bounds = array<i64: 1, 1, 1, 1>}, {transform_indices = @transform_3, window_bounds = array<i64: 1, 1, 1, 1>}]} {
    %c1_i32 = arith.constant 1 : i32
    %0 = arith.muli %arg1, %c1_i32 : i32
    %1 = arith.addi %0, %arg2 : i32
    %c0_i32 = arith.constant 0 : i32
    %2 = arith.cmpi eq, %arg2, %c0_i32 : i32
    %3 = arith.extui %2 : i1 to i32
    %c0_i32_0 = arith.constant 0 : i32
    %4 = arith.cmpi ne, %3, %c0_i32_0 : i32
    scf.if %4 {
      %cst_15 = arith.constant 0.000000e+00 : f32
      %48 = vector.broadcast %cst_15 : f32 to vector<1x256xf32>
      %c0_16 = arith.constant 0 : index
      %c0_17 = arith.constant 0 : index
      %49 = vector.load %arg7[%c0_16, %c0_17] : memref<1x256xf32, #tpu.memory_space<vmem>>, vector<1x256xf32>
      tpu.vector_store %arg7[%c0_16, %c0_17], %48 {strides = array<i32>} : memref<1x256xf32, #tpu.memory_space<vmem>>, vector<1x256xf32>,
      %cst_18 = arith.constant 0.000000e+00 : f32
      %50 = vector.broadcast %cst_18 : f32 to vector<1x256xf32>
      %c0_19 = arith.constant 0 : index
      %c0_20 = arith.constant 0 : index
      %51 = vector.load %arg8[%c0_19, %c0_20] : memref<1x256xf32, #tpu.memory_space<vmem>>, vector<1x256xf32>
      tpu.vector_store %arg8[%c0_19, %c0_20], %50 {strides = array<i32>} : memref<1x256xf32, #tpu.memory_space<vmem>>, vector<1x256xf32>,
    } else {
    }
    %c0 = arith.constant 0 : index
    %c0_1 = arith.constant 0 : index
    %c0_2 = arith.constant 0 : index
    %5 = vector.load %arg3[%c0, %c0_1, %c0_2] : memref<1x4x256xf32, #tpu.memory_space<vmem>>, vector<1x4x256xf32>
    %6 = vector.shape_cast %5 : vector<1x4x256xf32> to vector<4x256xf32>
    %c0_3 = arith.constant 0 : index
    %c0_4 = arith.constant 0 : index
    %c0_5 = arith.constant 0 : index
    %7 = vector.load %arg4[%c0_3, %c0_4, %c0_5] : memref<1x1x256xi32, #tpu.memory_space<vmem>>, vector<1x1x256xi32>
    %8 = vector.shape_cast %7 : vector<1x1x256xi32> to vector<1x256xi32>
    %cst = arith.constant dense<0xFF800000> : vector<256xf32>
    %9 = vector.multi_reduction <maximumf>, %6, %cst [0] : vector<4x256xf32> to vector<256xf32>
    %10 = vector.shape_cast %9 : vector<256xf32> to vector<1x256xf32>
    %11 = vector.broadcast %10 : vector<1x256xf32> to vector<4x256xf32>
    %12 = arith.subf %6, %11 : vector<4x256xf32>
    %13 = math.exp %12 : vector<4x256xf32>
    %cst_6 = arith.constant dense<0.000000e+00> : vector<256xf32>
    %14 = vector.multi_reduction <add>, %13, %cst_6 [0] : vector<4x256xf32> to vector<256xf32>
    %15 = vector.shape_cast %14 : vector<256xf32> to vector<1x256xf32>
    %16 = math.log %15 : vector<1x256xf32>
    %17 = vector.extract_strided_slice %12 {offsets = [0, 0], sizes = [1, 256], strides = [1, 1]} : vector<4x256xf32> to vector<1x256xf32>
    %c1_i32_7 = arith.constant 1 : i32
    %18 = vector.broadcast %c1_i32_7 : i32 to vector<1x256xi32>
    %19 = arith.cmpi eq, %8, %18 : vector<1x256xi32>
    %20 = vector.extract_strided_slice %12 {offsets = [1, 0], sizes = [1, 256], strides = [1, 1]} : vector<4x256xf32> to vector<1x256xf32>
    %21 = arith.select %19, %20, %17 : vector<1x256xi1>, vector<1x256xf32>
    %c2_i32 = arith.constant 2 : i32
    %22 = vector.broadcast %c2_i32 : i32 to vector<1x256xi32>
    %23 = arith.cmpi eq, %8, %22 : vector<1x256xi32>
    %24 = vector.extract_strided_slice %12 {offsets = [2, 0], sizes = [1, 256], strides = [1, 1]} : vector<4x256xf32> to vector<1x256xf32>
    %25 = arith.select %23, %24, %21 : vector<1x256xi1>, vector<1x256xf32>
    %c3_i32 = arith.constant 3 : i32
    %26 = vector.broadcast %c3_i32 : i32 to vector<1x256xi32>
    %27 = arith.cmpi eq, %8, %26 : vector<1x256xi32>
    %28 = vector.extract_strided_slice %12 {offsets = [3, 0], sizes = [1, 256], strides = [1, 1]} : vector<4x256xf32> to vector<1x256xf32>
    %29 = arith.select %27, %28, %25 : vector<1x256xi1>, vector<1x256xf32>
    %c255_i32 = arith.constant 255 : i32
    %30 = vector.broadcast %c255_i32 : i32 to vector<1x256xi32>
    %31 = arith.cmpi ne, %8, %30 : vector<1x256xi32>
    %32 = arith.subf %16, %29 : vector<1x256xf32>
    %cst_8 = arith.constant 0.000000e+00 : f32
    %33 = vector.broadcast %cst_8 : f32 to vector<1x256xf32>
    %34 = arith.select %31, %32, %33 : vector<1x256xi1>, vector<1x256xf32>
    %35 = arith.extui %31 : vector<1x256xi1> to vector<1x256xi32>
    %36 = arith.sitofp %35 : vector<1x256xi32> to vector<1x256xf32>
    %c1_i32_9 = arith.constant 1 : i32
    %37 = arith.addi %1, %c1_i32_9 : i32
    %c256_i32 = arith.constant 256 : i32
    %38 = arith.muli %37, %c256_i32 : i32
    %c256_i32_10 = arith.constant 256 : i32
    %39 = arith.cmpi sgt, %38, %c256_i32_10 : i32
    %true = arith.constant true
    %40 = arith.xori %39, %true : i1
    %41 = arith.extui %40 : i1 to i32
    %c0_i32_11 = arith.constant 0 : i32
    %42 = arith.cmpi ne, %41, %c0_i32_11 : i32
    scf.if %42 {
      %c0_15 = arith.constant 0 : index
      %c0_16 = arith.constant 0 : index
      %48 = vector.load %arg7[%c0_15, %c0_16] : memref<1x256xf32, #tpu.memory_space<vmem>>, vector<1x256xf32>
      %49 = arith.addf %48, %34 : vector<1x256xf32>
      %c0_17 = arith.constant 0 : index
      %c0_18 = arith.constant 0 : index
      %50 = vector.load %arg7[%c0_17, %c0_18] : memref<1x256xf32, #tpu.memory_space<vmem>>, vector<1x256xf32>
      tpu.vector_store %arg7[%c0_17, %c0_18], %49 {strides = array<i32>} : memref<1x256xf32, #tpu.memory_space<vmem>>, vector<1x256xf32>,
      %c0_19 = arith.constant 0 : index
      %c0_20 = arith.constant 0 : index
      %51 = vector.load %arg8[%c0_19, %c0_20] : memref<1x256xf32, #tpu.memory_space<vmem>>, vector<1x256xf32>
      %52 = arith.addf %51, %36 : vector<1x256xf32>
      %c0_21 = arith.constant 0 : index
      %c0_22 = arith.constant 0 : index
      %53 = vector.load %arg8[%c0_21, %c0_22] : memref<1x256xf32, #tpu.memory_space<vmem>>, vector<1x256xf32>
      tpu.vector_store %arg8[%c0_21, %c0_22], %52 {strides = array<i32>} : memref<1x256xf32, #tpu.memory_space<vmem>>, vector<1x256xf32>,
    } else {
    }
    %43 = arith.extui %39 : i1 to i32
    %c0_i32_12 = arith.constant 0 : i32
    %44 = arith.cmpi ne, %43, %c0_i32_12 : i32
    scf.if %44 {
      %c256_i32_15 = arith.constant 256 : i32
      %48 = arith.muli %1, %c256_i32_15 : i32
      %49 = tpu.iota {dimensions = array<i32: 1>} : vector<1x256xi32>
      %50 = vector.broadcast %48 : i32 to vector<1x256xi32>
      %51 = arith.addi %50, %49 : vector<1x256xi32>
      %c256_i32_16 = arith.constant 256 : i32
      %52 = vector.broadcast %c256_i32_16 : i32 to vector<1x256xi32>
      %53 = arith.cmpi slt, %51, %52 : vector<1x256xi32>
      %c0_17 = arith.constant 0 : index
      %c0_18 = arith.constant 0 : index
      %54 = vector.load %arg7[%c0_17, %c0_18] : memref<1x256xf32, #tpu.memory_space<vmem>>, vector<1x256xf32>
      %cst_19 = arith.constant 0.000000e+00 : f32
      %55 = vector.broadcast %cst_19 : f32 to vector<1x256xf32>
      %56 = arith.select %53, %34, %55 : vector<1x256xi1>, vector<1x256xf32>
      %57 = arith.addf %54, %56 : vector<1x256xf32>
      %c0_20 = arith.constant 0 : index
      %c0_21 = arith.constant 0 : index
      %58 = vector.load %arg7[%c0_20, %c0_21] : memref<1x256xf32, #tpu.memory_space<vmem>>, vector<1x256xf32>
      tpu.vector_store %arg7[%c0_20, %c0_21], %57 {strides = array<i32>} : memref<1x256xf32, #tpu.memory_space<vmem>>, vector<1x256xf32>,
      %c0_22 = arith.constant 0 : index
      %c0_23 = arith.constant 0 : index
      %59 = vector.load %arg8[%c0_22, %c0_23] : memref<1x256xf32, #tpu.memory_space<vmem>>, vector<1x256xf32>
      %cst_24 = arith.constant 0.000000e+00 : f32
      %60 = vector.broadcast %cst_24 : f32 to vector<1x256xf32>
      %61 = arith.select %53, %36, %60 : vector<1x256xi1>, vector<1x256xf32>
      %62 = arith.addf %59, %61 : vector<1x256xf32>
      %c0_25 = arith.constant 0 : index
      %c0_26 = arith.constant 0 : index
      %63 = vector.load %arg8[%c0_25, %c0_26] : memref<1x256xf32, #tpu.memory_space<vmem>>, vector<1x256xf32>
      tpu.vector_store %arg8[%c0_25, %c0_26], %62 {strides = array<i32>} : memref<1x256xf32, #tpu.memory_space<vmem>>, vector<1x256xf32>,
    } else {
    }
    %c0_i32_13 = arith.constant 0 : i32
    %45 = arith.cmpi eq, %arg2, %c0_i32_13 : i32
    %46 = arith.extui %45 : i1 to i32
    %c0_i32_14 = arith.constant 0 : i32
    %47 = arith.cmpi ne, %46, %c0_i32_14 : i32
    scf.if %47 {
      %c0_15 = arith.constant 0 : index
      %c0_16 = arith.constant 0 : index
      %48 = vector.load %arg7[%c0_15, %c0_16] : memref<1x256xf32, #tpu.memory_space<vmem>>, vector<1x256xf32>
      %cst_17 = arith.constant dense<0.000000e+00> : vector<1xf32>
      %49 = vector.multi_reduction <add>, %48, %cst_17 [1] : vector<1x256xf32> to vector<1xf32>
      %50 = vector.shape_cast %49 : vector<1xf32> to vector<1x1xf32>
      %51 = vector.shape_cast %50 : vector<1x1xf32> to vector<1x1x1x1xf32>
      %c0_18 = arith.constant 0 : index
      %c0_19 = arith.constant 0 : index
      %c0_20 = arith.constant 0 : index
      %c0_21 = arith.constant 0 : index
      %52 = vector.load %arg5[%c0_18, %c0_19, %c0_20, %c0_21] : memref<1x1x1x1xf32, #tpu.memory_space<vmem>>, vector<1x1x1x1xf32>
      tpu.vector_store %arg5[%c0_18, %c0_19, %c0_20, %c0_21], %51 {strides = array<i32>} : memref<1x1x1x1xf32, #tpu.memory_space<vmem>>, vector<1x1x1x1xf32>,
      %c0_22 = arith.constant 0 : index
      %c0_23 = arith.constant 0 : index
      %53 = vector.load %arg8[%c0_22, %c0_23] : memref<1x256xf32, #tpu.memory_space<vmem>>, vector<1x256xf32>
      %cst_24 = arith.constant dense<0.000000e+00> : vector<1xf32>
      %54 = vector.multi_reduction <add>, %53, %cst_24 [1] : vector<1x256xf32> to vector<1xf32>
      %55 = vector.shape_cast %54 : vector<1xf32> to vector<1x1xf32>
      %56 = vector.shape_cast %55 : vector<1x1xf32> to vector<1x1x1x1xf32>
      %c0_25 = arith.constant 0 : index
      %c0_26 = arith.constant 0 : index
      %c0_27 = arith.constant 0 : index
      %c0_28 = arith.constant 0 : index
      %57 = vector.load %arg6[%c0_25, %c0_26, %c0_27, %c0_28] : memref<1x1x1x1xf32, #tpu.memory_space<vmem>>, vector<1x1x1x1xf32>
      tpu.vector_store %arg6[%c0_25, %c0_26, %c0_27, %c0_28], %56 {strides = array<i32>} : memref<1x1x1x1xf32, #tpu.memory_space<vmem>>, vector<1x1x1x1xf32>,
    } else {
    }
    return
  }
  func.func @transform_0(%arg0: i32, %arg1: i32, %arg2: i32) -> (i32, i32, i32) {
    %c1_i32 = arith.constant 1 : i32
    %0 = arith.muli %arg1, %c1_i32 : i32
    %1 = arith.addi %0, %arg2 : i32
    %c0_i32 = arith.constant 0 : i32
    %2 = arith.minsi %1, %c0_i32 : i32
    %c0_i32_0 = arith.constant 0 : i32
    %c0_i32_1 = arith.constant 0 : i32
    return %arg0, %c0_i32_0, %2 : i32, i32, i32
  }
  func.func @transform_1(%arg0: i32, %arg1: i32, %arg2: i32) -> (i32, i32, i32) {
    %c1_i32 = arith.constant 1 : i32
    %0 = arith.muli %arg1, %c1_i32 : i32
    %1 = arith.addi %0, %arg2 : i32
    %c0_i32 = arith.constant 0 : i32
    %2 = arith.minsi %1, %c0_i32 : i32
    %c0_i32_0 = arith.constant 0 : i32
    %c0_i32_1 = arith.constant 0 : i32
    return %arg0, %c0_i32_0, %2 : i32, i32, i32
  }
  func.func @transform_2(%arg0: i32, %arg1: i32, %arg2: i32) -> (i32, i32, i32, i32) {
    %c0_i32 = arith.constant 0 : i32
    %c0_i32_0 = arith.constant 0 : i32
    %c0_i32_1 = arith.constant 0 : i32
    return %arg0, %arg1, %c0_i32, %c0_i32_0 : i32, i32, i32, i32
  }
  func.func @transform_3(%arg0: i32, %arg1: i32, %arg2: i32) -> (i32, i32, i32, i32) {
    %c0_i32 = arith.constant 0 : i32
    %c0_i32_0 = arith.constant 0 : i32
    %c0_i32_1 = arith.constant 0 : i32
    return %arg0, %arg1, %c0_i32, %c0_i32_0 : i32, i32, i32, i32
  }
}

</mosaic_0001>

<bundles_post_ra>
// kernel: tpu_custom_call.1
= control target key start
LH: loop header
LB: loop body
LE: loop exit
PB: predicated region body
PF: predicated region fallthrough
CT: control target
= control target key end

     0   :  { %9 = vsyncpa [#allocation5], 0  ;;  %s1138_s0 = inlined_call_operand.hbm [shape: f32[2,4,256], index: 0, kind: input, shape index: {}]   ;;  %s1139_s1 = inlined_call_operand.hbm [shape: s32[2,1,256], index: 1, kind: input, shape index: {}]   ;;  %s1140_s2 = inlined_call_operand.vmem [shape: f32[2,1,1,1], index: 2, kind: output, shape index: {0}]   ;;  %s1141_s3 = inlined_call_operand.vmem [shape: f32[2,1,1,1], index: 3, kind: output, shape index: {1}]  }
   0x1   :  { %11 = vsyncpa [#allocation5 + $0x1], 0 }
   0x2   :  { %12 = vsyncpa [#allocation7], 0 }
   0x3   :  { %14 = vsyncpa [#allocation7 + $0x1], 0  ;;  %s943_s12 = smov 0   ;;  %s945_s13 = smov 0  }
   0x4   :  { %s947_s14 = smov 0   ;;  %s949_s15 = smov 0  }
   0x5   :  { %s951_s16 = smov 0   ;;  %s953_s17 = smov 0  }
   0x6 LB: > { %s716_s18 = sadd.s32 4294967295, %s917_s17   ;;  %s39_s19 = sadd.s32 1, %s913_s16  ;;  %s917_s17 = sphi %s953_s17, %s20_s17   ;;  %s913_s16 = sphi %s951_s16, %s1157_s16   ;;  %s909_s15 = sphi %s949_s15, %s1156_s15   ;;  %s905_s14 = sphi %s947_s14, %s1155_s14   ;;  %s901_s13 = sphi %s945_s13, %s1154_s13   ;;  %s897_s12 = sphi %s943_s12, %s1153_s12  }
   0x7   : > { %p41_p0 = scmp.ge.s32.totalorder %s39_s19, 2  ;;  %s54_s20 = sadd.s32 1, %s905_s14 }
   0x8   : > { %p61_p1 = scmp.ne.s32.totalorder %s905_s14, %s901_s13  ;;  %p62_p2 = scmp.eq.s32.totalorder %s917_s17, 0 }
   0x9   : > { %s1159_s19 = smov (%p41_p0, %s39_s19), 0  ;;  %p67_p4 = scmp.ne.s32.totalorder %s901_s13, %s897_s12 }
   0xa   : > { %p979_p3 = por %p62_p2, %p61_p1  ;;  %s49_s22 = ssub.s32 %s913_s16, %s1159_s19 }
   0xb   : > { %p68_p5 = scmp.eq.s32.totalorder %s716_s18, 0  ;;  %p52_p6 = scmp.eq.s32.totalorder %s49_s22, 0 }
   0xc   : > { %p745_p8 = scmp.lt.s32.totalorder %s917_s17, 2  ;;  %s995_s25 = sand.u32 1, %s905_s14  }
   0xd   : > { %p986_p7 = por %p68_p5, %p67_p4  ;;  %s732_s26 = sshll.u32 %s913_s16, 7 }
   0xe   : > { %s992_s24 = scalar_select %p52_p6, %s905_s14, %s54_s20  }
   0xf   : > { %s1144_s23 = scalar_select %p986_p7, 1, 0 }
  0x10   : > { %s720_s27 = sshll.u32 %s995_s25, 3  ;;  %s1002_s30 = scalar_lea.hbm %s1138_s0, %s732_s26 }
  0x11   : > { %s185_s4 = scalar_lea.vmem [#allocation4], %s720_s27  ;;  %p1006_p9 = pnand %p745_p8, %p979_p3 }
  0x12   : > { %s198_s5 = sshll.u32 %s185_s4, 4  ;;  %s182_s7 = scalar_lea.sflag [#allocation5], %s995_s25  ;;  %s1010_s5 = int_to_ptr.vmem [resolvable:$true] %s198_s5 }
  0x13   : > { %s803_s8 = scalar_lea.hbm %s1002_s30, 128  ;;  %p805_p13 = pneg %p1006_p9 }
  0x14   : > { %p804_p12 = scmp.ne.s32.totalorder %s1002_s30, %s803_s8  ;;  %s808_s11 = scalar_lea.hbm %s1138_s0, 256 }
  0x15   : > { %p809_p2 = scmp.lt.u32.totalorder %s1002_s30, %s1138_s0  ;;  %p810_p3 = scmp.lt.u32.totalorder %s808_s11, %s803_s8 }
  0x16   : > { %p806_p0 = pnand %p805_p13, %p804_p12  ;;  %p812_p5 = scmp.lt.u32.totalorder %s803_s8, %s1002_s30 }
  0x17   : > { %p811_p4 = por %p810_p3, %p809_p2 }
  0x18   : > { %p807_p1 = pneg %p806_p0 }
  0x19   : > { %p813_p6 = por %p812_p5, %p811_p4 }
  0x1b   : > { %p814_p8 = pnand %p813_p6, %p807_p1 }
  0x1d   : > { %817 = shalt.err (!%p814_p8)
}
  0x1e   : > { %s818_s20 = scalar_lea.vmem %s1010_s5, 128  ;;  %s919_s21 = smov [#allocation4]  }
  0x1f   : > { %p819_p12 = scmp.ne.s32.totalorder %s1010_s5, %s818_s20  ;;  %s823_s22 = sshll.u32 %s919_s21, 4  ;;  %s824_s22 = int_to_ptr.vmem [resolvable:$false] %s823_s22 }
  0x20   : > { %s825_s26 = scalar_lea.vmem %s824_s22, 256  ;;  %p826_p11 = scmp.lt.s32.totalorder %s1010_s5, %s824_s22 }
  0x21   : > { %p821_p0 = pnand %p819_p12, %p805_p13  ;;  %p827_p2 = scmp.lt.s32.totalorder %s825_s26, %s818_s20 }
  0x23   : > { %p822_p10 = pneg %p821_p0  ;;  %p828_p3 = por %p827_p2, %p826_p11 }
  0x25   : > { %p829_p4 = pnand %p828_p3, %p822_p10 }
  0x27   : > { %832 = shalt.err (!%p829_p4)
}
  0x28   : > { %741 = dma.hbm_to_vmem [thread:$0]  (!%p1006_p9), %s1002_s30, 128, %s1010_s5, %s182_s7  }
  0x29   : > { %p1146_p1 = scmp.lt.s32.totalorder %s917_s17, 3  ;;  %p1147_p5 = scmp.ge.s32.totalorder %s917_s17, 1 }
  0x2a   : > { %s723_s28 = sshll.u32 %s995_s25, 1  ;;  %s733_s29 = sshll.u32 %s913_s16, 5 }
  0x2b   : > { %p1044_p6 = pnand %p1147_p5, %p1146_p1  ;;  %s1053_s9 = scalar_lea.hbm %s1139_s1, %s733_s29 }
  0x2c   : > { %s209_s10 = scalar_lea.vmem [#allocation6], %s723_s28  ;;  %s206_s30 = scalar_lea.sflag [#allocation7], %s995_s25 }
  0x2d   : > { %s1148_s27 = scalar_select %p1044_p6, 1, 0 }
  0x2e   : > { %s222_s11 = sshll.u32 %s209_s10, 4  ;;  %s833_s5 = scalar_lea.hbm %s1053_s9, 32  ;;  %s223_s11 = int_to_ptr.vmem [resolvable:$true] %s222_s11 }
  0x2f   : > { %p834_p10 = scmp.ne.s32.totalorder %s1053_s9, %s833_s5  ;;  %s838_s18 = scalar_lea.hbm %s1139_s1, 64 }
  0x30   : > { %p839_p12 = scmp.lt.u32.totalorder %s1053_s9, %s1139_s1  ;;  %p840_p0 = scmp.lt.u32.totalorder %s838_s18, %s833_s5 }
  0x31   : > { %p836_p11 = pnand %p834_p10, %p805_p13  ;;  %p842_p3 = scmp.lt.u32.totalorder %s833_s5, %s1053_s9 }
  0x32   : > { %p841_p2 = por %p840_p0, %p839_p12 }
  0x33   : > { %p837_p8 = pneg %p836_p11 }
  0x34   : > { %p843_p4 = por %p842_p3, %p841_p2 }
  0x36   : > { %p844_p1 = pnand %p843_p4, %p837_p8 }
  0x38   : > { %847 = shalt.err (!%p844_p1)
}
  0x39   : > { %s848_s25 = scalar_lea.vmem %s223_s11, 32  ;;  %s920_s22 = smov [#allocation6]  }
  0x3a   : > { %p849_p5 = scmp.ne.s32.totalorder %s223_s11, %s848_s25  ;;  %s853_s26 = sshll.u32 %s920_s22, 4  ;;  %s854_s26 = int_to_ptr.vmem [resolvable:$false] %s853_s26 }
  0x3b   : > { %s855_s28 = scalar_lea.vmem %s854_s26, 64  ;;  %p856_p7 = scmp.lt.s32.totalorder %s223_s11, %s854_s26 }
  0x3c   : > { %p851_p10 = pnand %p849_p5, %p805_p13  ;;  %p857_p6 = scmp.lt.s32.totalorder %s855_s28, %s848_s25 }
  0x3e   : > { %p852_p11 = pneg %p851_p10  ;;  %p858_p0 = por %p857_p6, %p856_p7 }
  0x40   : > { %p859_p12 = pnand %p858_p0, %p852_p11 }
  0x42   : > { %862 = shalt.err (!%p859_p12)
}
  0x43   : > { %744 = dma.hbm_to_vmem [thread:$0]  (!%p1006_p9), %s1053_s9, 32, %s223_s11, %s206_s30  }
  0x44   : > { %p1149_p8 = scmp.ne.s32.totalorder %s1148_s27, 0 }
  0x45   : > { %s233_s29 = sand.u32 (!%p1149_p8), 1, %s901_s13   ;;  %p1150_p13 = scmp.ne.s32.totalorder (!%p1149_p8), %s1144_s23, 0 }
  0x46   : > { %231 = sbr.rel (%p1149_p8) target bundleno = 313 (0x139), region = 28  ;;  %s727_s4 = sshll.u32 (!%p1149_p8), %s233_s29, 3 }
  0x47   : > { %s234_s8 = scalar_lea.sflag (!%p1149_p8), [#allocation5], %s233_s29  ;;  %s237_s10 = scalar_lea.vmem (!%p1149_p8), [#allocation4], %s727_s4 }
  0x4d   : > { %888 = dma.done.wait (%p1150_p13), %s234_s8, 128  }
  0x4e   : > { %890 = vsyncadd (%p1150_p13), %s234_s8, 4294967168  ;;  %s728_s5 = sshll.u32 %s233_s29, 1  ;;  %s243_s7 = scalar_lea.sflag [#allocation7], %s233_s29 }
  0x4f   : > { %s246_s6 = scalar_lea.vmem [#allocation6], %s728_s5 }
  0x50   : > { %892 = dma.done.wait (%p1150_p13), %s243_s7, 32  }
  0x51   : > { %894 = vsyncadd (%p1150_p13), %s243_s7, 4294967264  ;;  %v306_v0 = vlaneseq  ;;  %v921_v2 = vmov 0.0   ;;  %vm317_vm1 = vcmask 1043456   ;;  %v312_v3 = vld [vmem:[%s237_s10] sm:$0xff]  ;;  %v1094_v4 = vld [vmem:[%s246_s6] sm:$0x3] }
  0x52   : > { %v315_v5 = vcombine.high %v312_v3, %v312_v3  ;;  %v318_v6 = vsel %vm317_vm1, %v312_v3, -inf  ;;  %vm395_vm2 = vcmp.ne.s32.totalorder %v1094_v4, 255  ;;  %v922_v26 = vmov 1966171168   ;;  %p289_p7 = scmp.lt.s32.totalorder %s909_s15, 1 }
  0x53   : > { %vm1086_vm0 = vcmp.lt.s32.totalorder %v306_v0, 256  ;;  %v319_v7 = vrot.slane %v318_v6, 4  ;;  %v729_v9 = vsel %vm395_vm2, 1.0, %v921_v2  ;;  %v363_v27 = vunpack.c.l.s4 %v922_v26 }
  0x54   : > { %310 = vst.msk [vmem:[#allocation2] sm:$0x3] %vm1086_vm0, %v921_v2  ;;  %311 = vst.msk [vmem:[#allocation3] sm:$0x3] %vm1086_vm0, %v921_v2  ;;  %v325_v8 = vsel %vm317_vm1, %v315_v5, -inf  ;;  %v366_v29 = vshrl.u32 %v306_v0, 7 }
  0x55   : > { %v320_v11 = vmax.f32 %v318_v6, %v319_v7  ;;  %v326_v12 = vrot.slane %v325_v8, 4  ;;  %v364_v28 = vunpack.c.0.s8 %v363_v27  ;;  %vm360_vm3 = vcmp.eq.s32.totalorder %v1094_v4, 1  ;;  %s1161_s15 = smov (!%p289_p7, %s909_s15), 1 }
  0x56   : > { %vm387_vm4 = vcmp.eq.s32.totalorder %v1094_v4, 2  ;;  %vm391_vm5 = vcmp.eq.s32.totalorder %v1094_v4, 3  ;;  %v399_v55 = vsub.s32 0, %v366_v29  ;;  %v403_v57 = vsub.s32 1, %v366_v29  ;;  %s294_s9 = scalar_lea.vmem %s1140_s2, %s1161_s15  ;;  %s300_s12 = scalar_lea.vmem %s1141_s3, %s1161_s15 }
  0x57   : > { %v321_v14 = vrot.slane %v320_v11, 2  ;;  %v327_v15 = vmax.f32 %v325_v8, %v326_v12  ;;  %v367_v30 = vsub.s32 %v364_v28, %v366_v29  ;;  %vm546_vm6 = vcmask 1040384  }
  0x58   : > { %vm552_vm7 = vcmask 0  }
  0x59   : > { %v322_v16 = vmax.f32 %v320_v11, %v321_v14  ;;  %v328_v17 = vrot.slane %v327_v15, 2 }
  0x5b   : > { %v444_v10 = vld [vmem:[#allocation3] sm:$0x3]  ;;  %v323_v18 = vrot.slane %v322_v16, 1  ;;  %v329_v19 = vmax.f32 %v327_v15, %v328_v17  ;;  %v437_v7 = vld [vmem:[#allocation2] sm:$0x3] }
  0x5c   : > { %v445_v13 = vadd.f32 %v729_v9, %v444_v10 }
  0x5d   : > { %v324_v20 = vmax.f32 %v322_v16, %v323_v18  ;;  %v330_v21 = vrot.slane %v329_v19, 1 }
  0x5e   : > { %446 = vst.msk [vmem:[#allocation3] sm:$0x3] %vm1086_vm0, %v445_v13 }
  0x5f   : > { %v331_v22 = vmax.f32 %v329_v19, %v330_v21 }
  0x61   : > { %v334_v23 = vcombine.low %v324_v20, %v331_v22 }
  0x63   : > { %v336_v24 = vsub.f32 %v312_v3, %v334_v23 }
  0x65   : > { %v337_v25 = vmul.f32 1.442695, %v336_v24  ;;  %v368_v35 = vrot.slane %v336_v24, %v367_v30  ;;  %v554_v10 = vld [vmem:[#allocation3] sm:$0x3] }
  0x66   : > { %v559_v11 = vrot.slane %v554_v10, %v399_v55  ;;  %v563_v12 = vrot.slane %v554_v10, %v403_v57 }
  0x67   : > { %797 = vpow2.f32 %v337_v25  ;;  %v369_v41 = vcombine.high %v368_v35, %v368_v35  ;;  %v376_v44 = vrot.slane %v368_v35, %v367_v30 }
  0x68   : > { %v566_v18 = vsel %vm546_vm6, %v559_v11, 0.0  ;;  %v567_v19 = vsel %vm546_vm6, %v563_v12, 0.0 }
  0x69   : > { %v383_v47 = vrot.slane %v369_v41, %v367_v30  ;;  %v388_v50 = vcombine.high %v376_v44, %v376_v44  ;;  %v568_v4 = vadd.f32 %v567_v19, %v566_v18 }
  0x6b   : > { %v386_v52 = vsel %vm360_vm3, %v383_v47, %v376_v44  ;;  %v392_v53 = vcombine.high %v383_v47, %v383_v47 }
  0x6c   : > { %v390_v54 = vsel %vm387_vm4, %v388_v50, %v386_v52 }
  0x6d   : > { %v394_v56 = vsel %vm391_vm5, %v392_v53, %v390_v54 }
  0x6e   : > { %v400_v58 = vrot.slane %v394_v56, %v399_v55  ;;  %v404_v61 = vrot.slane %v394_v56, %v403_v57 }
  0x71   : > { %v798_v31 = vpop.eup %797 }
  0x72   : > { %v340_v32 = vcombine.high %v798_v31, %v798_v31  ;;  %v342_v33 = vsel %vm317_vm1, %v798_v31, 0.0 }
  0x73   : > { %v343_v34 = vrot.slane %v342_v33, 4 }
  0x74   : > { %v349_v36 = vsel %vm317_vm1, %v340_v32, 0.0 }
  0x75   : > { %v344_v37 = vadd.f32 %v343_v34, %v342_v33  ;;  %v350_v38 = vrot.slane %v349_v36, 4 }
  0x77   : > { %v345_v39 = vrot.slane %v344_v37, 2  ;;  %v351_v40 = vadd.f32 %v350_v38, %v349_v36 }
  0x79   : > { %v346_v42 = vadd.f32 %v345_v39, %v344_v37  ;;  %v352_v43 = vrot.slane %v351_v40, 2 }
  0x7b   : > { %v347_v45 = vrot.slane %v346_v42, 1  ;;  %v353_v46 = vadd.f32 %v352_v43, %v351_v40 }
  0x7d   : > { %v348_v48 = vadd.f32 %v347_v45, %v346_v42  ;;  %v354_v49 = vrot.slane %v353_v46, 1 }
  0x7f   : > { %v355_v51 = vadd.f32 %v354_v49, %v353_v46  ;;  %799 = vlog2.f32 %v348_v48 }
  0x81   : > { %801 = vlog2.f32 %v355_v51 }
  0x89   : > { %v800_v59 = vpop.eup %799 }
  0x8a   : > { %v357_v60 = vmul.f32 0.6931472, %v800_v59 }
  0x8b   : > { %v802_v62 = vpop.eup %801 }
  0x8c   : > { %v359_v63 = vmul.f32 0.6931472, %v802_v62  ;;  %v407_v0 = vsub.f32 %v357_v60, %v400_v58 }
  0x8e   : > { %v408_v2 = vsub.f32 %v359_v63, %v404_v61 }
  0x90   : > { %v411_v3 = vcombine.low %v407_v0, %v408_v2 }
  0x92   : > { %v418_v5 = vrot.slane %v411_v3, %v367_v30 }
  0x94   : > { %v425_v6 = vrot.slane %v418_v5, %v367_v30 }
  0x96   : > { %v427_v8 = vsel %vm395_vm2, %v425_v6, 0.0 }
  0x97   : > { %v438_v9 = vadd.f32 %v437_v7, %v427_v8 }
  0x99   : > { %443 = vst.msk [vmem:[#allocation2] sm:$0x3] %vm1086_vm0, %v438_v9 }
  0xa0   : > { %v534_v13 = vld [vmem:[#allocation2] sm:$0x3] }
  0xa1   : > { %v539_v14 = vrot.slane %v534_v13, %v399_v55  ;;  %v543_v15 = vrot.slane %v534_v13, %v403_v57 }
  0xa3   : > { %v547_v16 = vsel %vm546_vm6, %v539_v14, 0.0  ;;  %v548_v17 = vsel %vm546_vm6, %v543_v15, 0.0 }
  0xa4   : > { %v549_v20 = vadd.f32 %v548_v17, %v547_v16 }
  0xa6   : > { %550 = vadd.xlane.f32.xlu0 %v549_v20 }
  0xaa   : > { %569 = vadd.xlane.f32.xlu0 %v568_v4 }
 0x133   : > { %v551_v1 = vpop.xlane.xlu0 %550 }
 0x134   : > { %553 = vst.msk [vmem:[%s294_s9] sm:$0x1] %vm552_vm7, %v551_v1 }
 0x137   : > { %v570_v21 = vpop.xlane.xlu0 %569 }
 0x138   : > { %571 = vst.msk [vmem:[%s300_s12] sm:$0x1] %vm552_vm7, %v570_v21 }
 0x139 PF: > { %s20_s17 = sadd.s32 1, %s917_s17   ;;  %s1153_s12 = smov %s901_s13 }
 0x13a   : > { %p17_p9 = scmp.ge.s32.totalorder %s20_s17, 4   ;;  %s1154_s13 = smov %s905_s14 }
 0x13b   : > { %s1155_s14 = smov %s992_s24  ;;  %s1156_s15 = smov %s913_s16 }
 0x13c   : > { %s1157_s16 = smov %s1159_s19  ;;  %19 = sbr.rel (!%p17_p9) target bundleno = 6 (0x6), region = 109 }
 0x143   :  { %613 = vsyncpa [#allocation5], 1 }
 0x144   :  { %615 = vsyncpa [#allocation5 + $0x1], 1 }
 0x145   :  { %616 = vsyncpa [#allocation7], 1 }
 0x146   :  { %618 = vsyncpa [#allocation7 + $0x1], 1 }

</bundles_post_ra>
